<compile_context>
chip_gen: v7x
topology: tpu7x:2x2x1
jax: 0.10.0
libtpu: 0.0.40
codegen_flags: <defaults>
</compile_context>

<pallas_src>
import functools

import jax
import jax.numpy as jnp
from jax.experimental import pallas as pl
from jax.experimental.pallas import tpu as pltpu

_NEG_BIG = -1e30  # lane-padding value: exact-zero KL contribution (0 or -inf would not be)


def _kl_kernel(src_idx_ref, trg_idx_ref, n_ref,      # scalar prefetch (SMEM)
               logits_hbm,                            # input, memory_space=pl.ANY (HBM)
               out_ref,                               # (1, 8, 128) partial-sum slab
               src_buf, trg_buf, sems, acc_ref,       # scratch
               *, row_tile, lp, tiles_per_par):
    p = pl.program_id(0)          # parallel super-block (v7x: sharded across TensorCores)
    t = pl.program_id(1)          # sequential tile index within the super-block
    n = n_ref[0]                  # number of selected (valid) rows
    g = p * tiles_per_par + t     # global tile index
    base = g * row_tile           # first compacted-row id of this tile
    slot = t % 2

    def tile_valid(tile_g):
        return tile_g * row_tile < n

    def _row_copies(tile_g, r, buf_slot):
        rbase = tile_g * row_tile
        si = src_idx_ref[rbase + r]
        ti = trg_idx_ref[rbase + r]
        src_cp = pltpu.make_async_copy(logits_hbm.at[pl.ds(si, 1), :],
                                       src_buf.at[buf_slot, pl.ds(r, 1), :],
                                       sems.at[0, buf_slot])
        trg_cp = pltpu.make_async_copy(logits_hbm.at[pl.ds(ti, 1), :],
                                       trg_buf.at[buf_slot, pl.ds(r, 1), :],
                                       sems.at[1, buf_slot])
        return src_cp, trg_cp

    def start_fetch(tile_g, buf_slot):
        @pl.loop(0, row_tile)
        def _(r):
            src_cp, trg_cp = _row_copies(tile_g, r, buf_slot)
            src_cp.start()
            trg_cp.start()

    def wait_fetch(tile_g, buf_slot):
        @pl.loop(0, row_tile)
        def _(r):
            src_cp, trg_cp = _row_copies(tile_g, r, buf_slot)
            src_cp.wait()
            trg_cp.wait()

    @pl.when(t == 0)
    def _init():
        acc_ref[...] = jnp.zeros_like(acc_ref)

    # Prime the pipeline with this super-block's first tile (slot == 0 at t == 0).
    @pl.when(jnp.logical_and(t == 0, tile_valid(g)))
    def _prime():
        start_fetch(g, slot)

    # Prefetch the next tile into the other buffer slot while computing this one.
    @pl.when(jnp.logical_and(t + 1 < tiles_per_par, tile_valid(g + 1)))
    def _prefetch():
        start_fetch(g + 1, 1 - slot)

    # Tiles entirely past the selected-row count do no DMA wait and no compute.
    @pl.when(tile_valid(g))
    def _compute():
        wait_fetch(g, slot)

        src = src_buf[slot].astype(jnp.float32)   # (row_tile, lp) target-logit rows
        trg = trg_buf[slot].astype(jnp.float32)   # (row_tile, lp) input-logit rows

        # log_softmax(src) with exp reuse: one exp pass yields both q and exp(q).
        s_max = jnp.max(src, axis=-1, keepdims=True)
        s_ctr = src - s_max
        s_exp = jnp.exp(s_ctr)
        s_sum = jnp.sum(s_exp, axis=-1, keepdims=True)
        q = s_ctr - jnp.log(s_sum)                     # target = log_softmax(src)
        q_prob = s_exp * pl.reciprocal(s_sum)          # exp(q) without a second exp pass

        # log_softmax(trg)
        t_max = jnp.max(trg, axis=-1, keepdims=True)
        t_ctr = trg - t_max
        t_lse = jnp.log(jnp.sum(jnp.exp(t_ctr), axis=-1, keepdims=True))
        p_log = t_ctr - t_lse                          # input = log_softmax(trg)

        # torch.nn.KLDivLoss(log_target=True): pointwise = exp(target) * (target - input)
        pointwise = q_prob * (q - p_log)

        # Per-row validity mask (only the tail tile has invalid rows).
        row_ids = base + jax.lax.broadcasted_iota(jnp.int32, (row_tile, 1), 0)
        pointwise = jnp.where(row_ids < n, pointwise, 0.0)

        # Fold into the (8, 128) vreg-shaped accumulator using only tile-aligned static
        # slices (pure VPU adds; no per-step cross-lane reduce, no 1-element store).
        folded = pointwise[:, 0:128]
        for c0 in range(128, lp, 128):
            folded = folded + pointwise[:, c0:c0 + 128]
        part = folded[0:8, :]
        for r0 in range(8, row_tile, 8):
            part = part + folded[r0:r0 + 8, :]
        acc_ref[...] += part

    @pl.when(t == tiles_per_par - 1)
    def _finalize():
        out_ref[0] = acc_ref[...]


def kl_div_regularization(shift_inputs, shift_logits, shift_labels, *, lambd, num_labels):
    B, S, L = shift_logits.shape
    assert L == num_labels
    R = B * S

    logits = shift_logits.reshape(R, L)
    # Lane padding to a multiple of 128 (lane-dense vregs / unmasked loads). A large
    # finite negative constant makes padded lanes contribute exactly zero KL (no NaN).
    Lp = max(128, pl.cdiv(L, 128) * 128)
    if Lp != L:
        logits = jnp.pad(logits, ((0, 0), (0, Lp - L)), constant_values=_NEG_BIG)
    # Logits stay in their native dtype (e.g. bf16) in HBM/VMEM; upcast happens in-kernel.

    src_mask = (shift_inputs.reshape(-1) != -100)
    trg_mask = (shift_labels.reshape(-1) != -100)
    n = jnp.sum(src_mask).astype(jnp.int32)
    # TODO(synk): PyTorch asserts equal src/trg selected counts; no in-kernel assert emitted.

    # Row-tile sizing: keep the f32 compute tile ~<= 4 MiB so elementwise intermediates
    # plus the four double-buffered gather buffers stay well under the 48 MiB VMEM limit
    # (safe on v7x's 64 MiB physical VMEM; plenty of headroom on v5e/v6e's 128 MiB).
    max_compute_tile_bytes = 4 * 1024 * 1024
    row_tile = max_compute_tile_bytes // (Lp * 4)
    row_tile = int(max(8, min(256, (row_tile // 8) * 8)))
    row_tile = min(row_tile, pl.cdiv(R, 8) * 8)   # no need to exceed the row count

    tiles_total = pl.cdiv(R, row_tile)
    num_par = 2 if tiles_total >= 2 else 1        # v7x: 2 TensorCores; harmless on v5e/v6e
    tiles_per_par = pl.cdiv(tiles_total, num_par)
    r_pad = num_par * tiles_per_par * row_tile

    # Compacted row indices (masked_select order) via size-padded flatnonzero; they ride
    # into SMEM through scalar prefetch and drive the in-kernel per-row DMA gather.
    # (SMEM footprint is 2 * 4 * r_pad bytes; fine for typical B*S row counts.)
    src_idx = jnp.flatnonzero(src_mask, size=r_pad, fill_value=0).astype(jnp.int32)
    trg_idx = jnp.flatnonzero(trg_mask, size=r_pad, fill_value=0).astype(jnp.int32)
    n_arr = n.reshape(1)

    kernel = functools.partial(_kl_kernel, row_tile=row_tile, lp=Lp,
                               tiles_per_par=tiles_per_par)

    partials = pl.pallas_call(
        kernel,
        out_shape=jax.ShapeDtypeStruct((num_par, 8, 128), jnp.float32),
        grid_spec=pltpu.PrefetchScalarGridSpec(
            num_scalar_prefetch=3,
            grid=(num_par, tiles_per_par),
            in_specs=[pl.BlockSpec(memory_space=pl.ANY)],   # logits stay in HBM
            out_specs=pl.BlockSpec((1, 8, 128), lambda p, t, *_: (p, 0, 0)),
            scratch_shapes=[
                pltpu.VMEM((2, row_tile, Lp), logits.dtype),   # src rows, double-buffered
                pltpu.VMEM((2, row_tile, Lp), logits.dtype),   # trg rows, double-buffered
                pltpu.SemaphoreType.DMA((2, 2)),               # [operand, slot]
                pltpu.VMEM((8, 128), jnp.float32),             # partial-sum accumulator
            ],
        ),
        compiler_params=pltpu.CompilerParams(
            dimension_semantics=("parallel", "arbitrary"),
            vmem_limit_bytes=48 * 1024 * 1024,
        ),
    )(src_idx, trg_idx, n_arr, logits)

    total = jnp.sum(partials)
    # reduction='batchmean' -> divide by number of selected rows; guard n == 0
    # (PyTorch would emit NaN for the empty-selection case).
    denom = jnp.maximum(n, 1).astype(jnp.float32)
    return jnp.float32(lambd) * total / denom


def _reference(shift_inputs, shift_logits, shift_labels, lambd, L):
    """Pure-JAX reference mirroring the PyTorch forward."""
    logits = shift_logits.reshape(-1, L).astype(jnp.float32)
    sm = shift_inputs.reshape(-1) != -100
    tm = shift_labels.reshape(-1) != -100
    src = jnp.take(logits, jnp.flatnonzero(sm), axis=0)   # target rows
    trg = jnp.take(logits, jnp.flatnonzero(tm), axis=0)   # input rows
    q = jax.nn.log_softmax(src, axis=-1)
    p = jax.nn.log_softmax(trg, axis=-1)
    n_rows = src.shape[0]
    kl = jnp.sum(jnp.exp(q) * (q - p)) / n_rows
    return lambd * kl


if __name__ == "__main__":
    key = jax.random.PRNGKey(0)
    B, S, L = 2, 8, 32
    lambd = 0.5

    k1, k2, k3 = jax.random.split(key, 3)
    shift_logits = jax.random.normal(k1, (B, S, L), dtype=jnp.float32)
    shift_inputs = jax.random.randint(k2, (B, S), 0, 1000, dtype=jnp.int32)
    shift_labels = jax.random.randint(k3, (B, S), 0, 1000, dtype=jnp.int32)

    # Equal numbers of masked positions in inputs and labels (the PyTorch module asserts
    # the selected shapes match) but at *different* positions so the KL penalty is nonzero.
    pos = jnp.arange(S)[None, :]
    shift_inputs = jnp.where(pos >= S - 2, -100, shift_inputs)   # mask last 2 per sequence
    shift_labels = jnp.where(pos < 2, -100, shift_labels)        # mask first 2 per sequence

    out = kl_div_regularization(
        shift_inputs, shift_logits, shift_labels, lambd=lambd, num_labels=L
    )
    out = jax.block_until_ready(out)

    ref = jax.block_until_ready(
        _reference(shift_inputs, shift_logits, shift_labels, lambd, L)
    )
    assert jnp.allclose(out, ref, rtol=1e-5, atol=1e-5), (out, ref)

    print("KERNEL_OK")
</pallas_src>

<mosaic_0001>
module attributes {stable_mosaic.version = 11 : i64} {
  func.func @_kl_kernel(%arg0: i32, %arg1: i32, %arg2: memref<16xi32, #tpu.memory_space<smem>>, %arg3: memref<16xi32, #tpu.memory_space<smem>>, %arg4: memref<1xi32, #tpu.memory_space<smem>>, %arg5: memref<16x128xf32, #tpu.memory_space<any>>, %arg6: memref<1x8x128xf32, #tpu.memory_space<vmem>>, %arg7: memref<2x16x128xf32, #tpu.memory_space<vmem>>, %arg8: memref<2x16x128xf32, #tpu.memory_space<vmem>>, %arg9: memref<2x2x!tpu.dma_semaphore, #tpu.memory_space<semaphore_mem>>, %arg10: memref<8x128xf32, #tpu.memory_space<vmem>>) attributes {dimension_semantics = [#tpu.dimension_semantics<parallel>, #tpu.dimension_semantics<arbitrary>], iteration_bounds = array<i64: 1, 1>, scalar_prefetch = 3 : i64, scratch_operands = 4 : i64, tpu.core_type = #tpu.core_type<tc>, window_params = [{}, {transform_indices = @transform_1, window_bounds = array<i64: 1, 8, 128>}]} {
    %c0 = arith.constant 0 : index
    %0 = memref.load %arg4[%c0] : memref<1xi32, #tpu.memory_space<smem>>
    %c1_i32 = arith.constant 1 : i32
    %1 = arith.muli %arg0, %c1_i32 : i32
    %2 = arith.addi %1, %arg1 : i32
    %c16_i32 = arith.constant 16 : i32
    %3 = arith.muli %2, %c16_i32 : i32
    %c2_i32 = arith.constant 2 : i32
    %c0_i32 = arith.constant 0 : i32
    %4 = arith.cmpi eq, %c2_i32, %c0_i32 : i32
    %c1_i32_0 = arith.constant 1 : i32
    %5 = arith.select %4, %c1_i32_0, %c2_i32 : i32
    %6 = arith.remsi %arg1, %5 : i32
    %c0_i32_1 = arith.constant 0 : i32
    %7 = arith.cmpi ne, %6, %c0_i32_1 : i32
    %c0_i32_2 = arith.constant 0 : i32
    %8 = arith.cmpi slt, %6, %c0_i32_2 : i32
    %c0_i32_3 = arith.constant 0 : i32
    %9 = arith.cmpi slt, %5, %c0_i32_3 : i32
    %10 = arith.xori %8, %9 : i1
    %11 = arith.andi %10, %7 : i1
    %12 = arith.addi %6, %5 : i32
    %13 = arith.select %11, %12, %6 : i32
    %c0_i32_4 = arith.constant 0 : i32
    %14 = arith.cmpi eq, %arg1, %c0_i32_4 : i32
    %15 = arith.extui %14 : i1 to i32
    %c0_i32_5 = arith.constant 0 : i32
    %16 = arith.cmpi ne, %15, %c0_i32_5 : i32
    scf.if %16 {
      %cst = arith.constant 0.000000e+00 : f32
      %38 = vector.broadcast %cst : f32 to vector<8x128xf32>
      %c0_18 = arith.constant 0 : index
      %c0_19 = arith.constant 0 : index
      %39 = vector.load %arg10[%c0_18, %c0_19] : memref<8x128xf32, #tpu.memory_space<vmem>>, vector<8x128xf32>
      tpu.vector_store %arg10[%c0_18, %c0_19], %38 {strides = array<i32>} : memref<8x128xf32, #tpu.memory_space<vmem>>, vector<8x128xf32>,
    } else {
    }
    %c0_i32_6 = arith.constant 0 : i32
    %17 = arith.cmpi eq, %arg1, %c0_i32_6 : i32
    %c16_i32_7 = arith.constant 16 : i32
    %18 = arith.muli %2, %c16_i32_7 : i32
    %19 = arith.cmpi slt, %18, %0 : i32
    %20 = arith.andi %17, %19 : i1
    %21 = arith.extui %20 : i1 to i32
    %c0_i32_8 = arith.constant 0 : i32
    %22 = arith.cmpi ne, %21, %c0_i32_8 : i32
    scf.if %22 {
      %c0_i32_18 = arith.constant 0 : i32
      %c16_i32_19 = arith.constant 16 : i32
      %38 = arith.addi %c0_i32_18, %c16_i32_19 : i32
      %c1_i32_20 = arith.constant 1 : i32
      scf.for %arg11 = %c0_i32_18 to %38 step %c1_i32_20  : i32 {
        %c1_i32_22 = arith.constant 1 : i32
        %39 = arith.muli %arg11, %c1_i32_22 : i32
        %c0_i32_23 = arith.constant 0 : i32
        %40 = arith.addi %c0_i32_23, %39 : i32
        %c16_i32_24 = arith.constant 16 : i32
        %41 = arith.muli %2, %c16_i32_24 : i32
        %42 = arith.addi %41, %40 : i32
        %43 = arith.index_cast %42 : i32 to index
        %44 = memref.load %arg2[%43] : memref<16xi32, #tpu.memory_space<smem>>
        %45 = arith.addi %41, %40 : i32
        %46 = arith.index_cast %45 : i32 to index
        %47 = memref.load %arg3[%46] : memref<16xi32, #tpu.memory_space<smem>>
        %c0_i32_25 = arith.constant 0 : i32
        %c0_i32_26 = arith.constant 0 : i32
        %48 = tpu.memref_slice %arg5[%44, %c0_i32_26] : memref<16x128xf32, #tpu.memory_space<any>> -> memref<1x128xf32, #tpu.memory_space<any>>
        %c0_i32_27 = arith.constant 0 : i32
        %49 = tpu.memref_slice %arg7[%13, %40, %c0_i32_27] : memref<2x16x128xf32, #tpu.memory_space<vmem>> -> memref<1x1x128xf32, #tpu.memory_space<vmem>>
        %50 = tpu.memref_squeeze %49 : memref<1x1x128xf32, #tpu.memory_space<vmem>> -> memref<1x128xf32, #tpu.memory_space<vmem>>
        %51 = tpu.memref_slice %arg9[%c0_i32_25, %13] : memref<2x2x!tpu.dma_semaphore, #tpu.memory_space<semaphore_mem>> -> memref<1x1x!tpu.dma_semaphore, #tpu.memory_space<semaphore_mem>>
        %52 = tpu.memref_squeeze %51 : memref<1x1x!tpu.dma_semaphore, #tpu.memory_space<semaphore_mem>> -> memref<!tpu.dma_semaphore, #tpu.memory_space<semaphore_mem>>
        tpu.enqueue_dma source(%48 : memref<1x128xf32, #tpu.memory_space<any>>) target(%50 : memref<1x128xf32, #tpu.memory_space<vmem>>) target_semaphore(%52 : memref<!tpu.dma_semaphore, #tpu.memory_space<semaphore_mem>>)
        %c1_i32_28 = arith.constant 1 : i32
        %c0_i32_29 = arith.constant 0 : i32
        %53 = tpu.memref_slice %arg5[%47, %c0_i32_29] : memref<16x128xf32, #tpu.memory_space<any>> -> memref<1x128xf32, #tpu.memory_space<any>>
        %c0_i32_30 = arith.constant 0 : i32
        %54 = tpu.memref_slice %arg8[%13, %40, %c0_i32_30] : memref<2x16x128xf32, #tpu.memory_space<vmem>> -> memref<1x1x128xf32, #tpu.memory_space<vmem>>
        %55 = tpu.memref_squeeze %54 : memref<1x1x128xf32, #tpu.memory_space<vmem>> -> memref<1x128xf32, #tpu.memory_space<vmem>>
        %56 = tpu.memref_slice %arg9[%c1_i32_28, %13] : memref<2x2x!tpu.dma_semaphore, #tpu.memory_space<semaphore_mem>> -> memref<1x1x!tpu.dma_semaphore, #tpu.memory_space<semaphore_mem>>
        %57 = tpu.memref_squeeze %56 : memref<1x1x!tpu.dma_semaphore, #tpu.memory_space<semaphore_mem>> -> memref<!tpu.dma_semaphore, #tpu.memory_space<semaphore_mem>>
        tpu.enqueue_dma source(%53 : memref<1x128xf32, #tpu.memory_space<any>>) target(%55 : memref<1x128xf32, #tpu.memory_space<vmem>>) target_semaphore(%57 : memref<!tpu.dma_semaphore, #tpu.memory_space<semaphore_mem>>)
      }
      %c16_i32_21 = arith.constant 16 : i32
    } else {
    }
    %c1_i32_9 = arith.constant 1 : i32
    %23 = arith.addi %arg1, %c1_i32_9 : i32
    %c1_i32_10 = arith.constant 1 : i32
    %24 = arith.cmpi slt, %23, %c1_i32_10 : i32
    %c1_i32_11 = arith.constant 1 : i32
    %25 = arith.addi %2, %c1_i32_11 : i32
    %c16_i32_12 = arith.constant 16 : i32
    %26 = arith.muli %25, %c16_i32_12 : i32
    %27 = arith.cmpi slt, %26, %0 : i32
    %28 = arith.andi %24, %27 : i1
    %29 = arith.extui %28 : i1 to i32
    %c0_i32_13 = arith.constant 0 : i32
    %30 = arith.cmpi ne, %29, %c0_i32_13 : i32
    scf.if %30 {
      %c1_i32_18 = arith.constant 1 : i32
      %38 = arith.addi %2, %c1_i32_18 : i32
      %c1_i32_19 = arith.constant 1 : i32
      %39 = arith.subi %c1_i32_19, %13 : i32
      %c0_i32_20 = arith.constant 0 : i32
      %c16_i32_21 = arith.constant 16 : i32
      %40 = arith.addi %c0_i32_20, %c16_i32_21 : i32
      %c1_i32_22 = arith.constant 1 : i32
      scf.for %arg11 = %c0_i32_20 to %40 step %c1_i32_22  : i32 {
        %c1_i32_24 = arith.constant 1 : i32
        %41 = arith.muli %arg11, %c1_i32_24 : i32
        %c0_i32_25 = arith.constant 0 : i32
        %42 = arith.addi %c0_i32_25, %41 : i32
        %c16_i32_26 = arith.constant 16 : i32
        %43 = arith.muli %38, %c16_i32_26 : i32
        %44 = arith.addi %43, %42 : i32
        %45 = arith.index_cast %44 : i32 to index
        %46 = memref.load %arg2[%45] : memref<16xi32, #tpu.memory_space<smem>>
        %47 = arith.addi %43, %42 : i32
        %48 = arith.index_cast %47 : i32 to index
        %49 = memref.load %arg3[%48] : memref<16xi32, #tpu.memory_space<smem>>
        %c0_i32_27 = arith.constant 0 : i32
        %c0_i32_28 = arith.constant 0 : i32
        %50 = tpu.memref_slice %arg5[%46, %c0_i32_28] : memref<16x128xf32, #tpu.memory_space<any>> -> memref<1x128xf32, #tpu.memory_space<any>>
        %c0_i32_29 = arith.constant 0 : i32
        %51 = tpu.memref_slice %arg7[%39, %42, %c0_i32_29] : memref<2x16x128xf32, #tpu.memory_space<vmem>> -> memref<1x1x128xf32, #tpu.memory_space<vmem>>
        %52 = tpu.memref_squeeze %51 : memref<1x1x128xf32, #tpu.memory_space<vmem>> -> memref<1x128xf32, #tpu.memory_space<vmem>>
        %53 = tpu.memref_slice %arg9[%c0_i32_27, %39] : memref<2x2x!tpu.dma_semaphore, #tpu.memory_space<semaphore_mem>> -> memref<1x1x!tpu.dma_semaphore, #tpu.memory_space<semaphore_mem>>
        %54 = tpu.memref_squeeze %53 : memref<1x1x!tpu.dma_semaphore, #tpu.memory_space<semaphore_mem>> -> memref<!tpu.dma_semaphore, #tpu.memory_space<semaphore_mem>>
        tpu.enqueue_dma source(%50 : memref<1x128xf32, #tpu.memory_space<any>>) target(%52 : memref<1x128xf32, #tpu.memory_space<vmem>>) target_semaphore(%54 : memref<!tpu.dma_semaphore, #tpu.memory_space<semaphore_mem>>)
        %c1_i32_30 = arith.constant 1 : i32
        %c0_i32_31 = arith.constant 0 : i32
        %55 = tpu.memref_slice %arg5[%49, %c0_i32_31] : memref<16x128xf32, #tpu.memory_space<any>> -> memref<1x128xf32, #tpu.memory_space<any>>
        %c0_i32_32 = arith.constant 0 : i32
        %56 = tpu.memref_slice %arg8[%39, %42, %c0_i32_32] : memref<2x16x128xf32, #tpu.memory_space<vmem>> -> memref<1x1x128xf32, #tpu.memory_space<vmem>>
        %57 = tpu.memref_squeeze %56 : memref<1x1x128xf32, #tpu.memory_space<vmem>> -> memref<1x128xf32, #tpu.memory_space<vmem>>
        %58 = tpu.memref_slice %arg9[%c1_i32_30, %39] : memref<2x2x!tpu.dma_semaphore, #tpu.memory_space<semaphore_mem>> -> memref<1x1x!tpu.dma_semaphore, #tpu.memory_space<semaphore_mem>>
        %59 = tpu.memref_squeeze %58 : memref<1x1x!tpu.dma_semaphore, #tpu.memory_space<semaphore_mem>> -> memref<!tpu.dma_semaphore, #tpu.memory_space<semaphore_mem>>
        tpu.enqueue_dma source(%55 : memref<1x128xf32, #tpu.memory_space<any>>) target(%57 : memref<1x128xf32, #tpu.memory_space<vmem>>) target_semaphore(%59 : memref<!tpu.dma_semaphore, #tpu.memory_space<semaphore_mem>>)
      }
      %c16_i32_23 = arith.constant 16 : i32
    } else {
    }
    %c16_i32_14 = arith.constant 16 : i32
    %31 = arith.muli %2, %c16_i32_14 : i32
    %32 = arith.cmpi slt, %31, %0 : i32
    %33 = arith.extui %32 : i1 to i32
    %c0_i32_15 = arith.constant 0 : i32
    %34 = arith.cmpi ne, %33, %c0_i32_15 : i32
    scf.if %34 {
      %c0_i32_18 = arith.constant 0 : i32
      %c16_i32_19 = arith.constant 16 : i32
      %38 = arith.addi %c0_i32_18, %c16_i32_19 : i32
      %c1_i32_20 = arith.constant 1 : i32
      scf.for %arg11 = %c0_i32_18 to %38 step %c1_i32_20  : i32 {
        %c1_i32_34 = arith.constant 1 : i32
        %85 = arith.muli %arg11, %c1_i32_34 : i32
        %c0_i32_35 = arith.constant 0 : i32
        %86 = arith.addi %c0_i32_35, %85 : i32
        %c16_i32_36 = arith.constant 16 : i32
        %87 = arith.muli %2, %c16_i32_36 : i32
        %88 = arith.addi %87, %86 : i32
        %89 = arith.index_cast %88 : i32 to index
        %90 = memref.load %arg2[%89] : memref<16xi32, #tpu.memory_space<smem>>
        %91 = arith.addi %87, %86 : i32
        %92 = arith.index_cast %91 : i32 to index
        %93 = memref.load %arg3[%92] : memref<16xi32, #tpu.memory_space<smem>>
        %c0_i32_37 = arith.constant 0 : i32
        %c0_i32_38 = arith.constant 0 : i32
        %94 = tpu.memref_slice %arg5[%90, %c0_i32_38] : memref<16x128xf32, #tpu.memory_space<any>> -> memref<1x128xf32, #tpu.memory_space<any>>
        %c0_i32_39 = arith.constant 0 : i32
        %95 = tpu.memref_slice %arg7[%13, %86, %c0_i32_39] : memref<2x16x128xf32, #tpu.memory_space<vmem>> -> memref<1x1x128xf32, #tpu.memory_space<vmem>>
        %96 = tpu.memref_squeeze %95 : memref<1x1x128xf32, #tpu.memory_space<vmem>> -> memref<1x128xf32, #tpu.memory_space<vmem>>
        %97 = tpu.memref_slice %arg9[%c0_i32_37, %13] : memref<2x2x!tpu.dma_semaphore, #tpu.memory_space<semaphore_mem>> -> memref<1x1x!tpu.dma_semaphore, #tpu.memory_space<semaphore_mem>>
        %98 = tpu.memref_squeeze %97 : memref<1x1x!tpu.dma_semaphore, #tpu.memory_space<semaphore_mem>> -> memref<!tpu.dma_semaphore, #tpu.memory_space<semaphore_mem>>
        tpu.wait_dma2 semaphore(%98 : memref<!tpu.dma_semaphore, #tpu.memory_space<semaphore_mem>>) src(%94 : memref<1x128xf32, #tpu.memory_space<any>>) dst(%96 : memref<1x128xf32, #tpu.memory_space<vmem>>)
        %c1_i32_40 = arith.constant 1 : i32
        %c0_i32_41 = arith.constant 0 : i32
        %99 = tpu.memref_slice %arg5[%93, %c0_i32_41] : memref<16x128xf32, #tpu.memory_space<any>> -> memref<1x128xf32, #tpu.memory_space<any>>
        %c0_i32_42 = arith.constant 0 : i32
        %100 = tpu.memref_slice %arg8[%13, %86, %c0_i32_42] : memref<2x16x128xf32, #tpu.memory_space<vmem>> -> memref<1x1x128xf32, #tpu.memory_space<vmem>>
        %101 = tpu.memref_squeeze %100 : memref<1x1x128xf32, #tpu.memory_space<vmem>> -> memref<1x128xf32, #tpu.memory_space<vmem>>
        %102 = tpu.memref_slice %arg9[%c1_i32_40, %13] : memref<2x2x!tpu.dma_semaphore, #tpu.memory_space<semaphore_mem>> -> memref<1x1x!tpu.dma_semaphore, #tpu.memory_space<semaphore_mem>>
        %103 = tpu.memref_squeeze %102 : memref<1x1x!tpu.dma_semaphore, #tpu.memory_space<semaphore_mem>> -> memref<!tpu.dma_semaphore, #tpu.memory_space<semaphore_mem>>
        tpu.wait_dma2 semaphore(%103 : memref<!tpu.dma_semaphore, #tpu.memory_space<semaphore_mem>>) src(%99 : memref<1x128xf32, #tpu.memory_space<any>>) dst(%101 : memref<1x128xf32, #tpu.memory_space<vmem>>)
      }
      %c16_i32_21 = arith.constant 16 : i32
      %39 = arith.index_cast %13 : i32 to index
      %c0_22 = arith.constant 0 : index
      %c0_23 = arith.constant 0 : index
      %40 = vector.load %arg7[%39, %c0_22, %c0_23] : memref<2x16x128xf32, #tpu.memory_space<vmem>>, vector<1x16x128xf32>
      %41 = vector.shape_cast %40 : vector<1x16x128xf32> to vector<16x128xf32>
      %42 = arith.index_cast %13 : i32 to index
      %c0_24 = arith.constant 0 : index
      %c0_25 = arith.constant 0 : index
      %43 = vector.load %arg8[%42, %c0_24, %c0_25] : memref<2x16x128xf32, #tpu.memory_space<vmem>>, vector<1x16x128xf32>
      %44 = vector.shape_cast %43 : vector<1x16x128xf32> to vector<16x128xf32>
      %cst = arith.constant dense<0xFF800000> : vector<16xf32>
      %45 = vector.multi_reduction <maximumf>, %41, %cst [1] : vector<16x128xf32> to vector<16xf32>
      %46 = vector.shape_cast %45 : vector<16xf32> to vector<16x1xf32>
      %47 = vector.broadcast %46 : vector<16x1xf32> to vector<16x128xf32>
      %48 = arith.subf %41, %47 : vector<16x128xf32>
      %49 = math.exp %48 : vector<16x128xf32>
      %cst_26 = arith.constant dense<0.000000e+00> : vector<16xf32>
      %50 = vector.multi_reduction <add>, %49, %cst_26 [1] : vector<16x128xf32> to vector<16xf32>
      %51 = vector.shape_cast %50 : vector<16xf32> to vector<16x1xf32>
      %52 = math.log %51 : vector<16x1xf32>
      %53 = vector.broadcast %52 : vector<16x1xf32> to vector<16x128xf32>
      %54 = arith.subf %48, %53 : vector<16x128xf32>
      %55 = tpu.reciprocal %51 : vector<16x1xf32> -> vector<16x1xf32>
      %56 = vector.broadcast %55 : vector<16x1xf32> to vector<16x128xf32>
      %57 = arith.mulf %49, %56 : vector<16x128xf32>
      %cst_27 = arith.constant dense<0xFF800000> : vector<16xf32>
      %58 = vector.multi_reduction <maximumf>, %44, %cst_27 [1] : vector<16x128xf32> to vector<16xf32>
      %59 = vector.shape_cast %58 : vector<16xf32> to vector<16x1xf32>
      %60 = vector.broadcast %59 : vector<16x1xf32> to vector<16x128xf32>
      %61 = arith.subf %44, %60 : vector<16x128xf32>
      %62 = math.exp %61 : vector<16x128xf32>
      %cst_28 = arith.constant dense<0.000000e+00> : vector<16xf32>
      %63 = vector.multi_reduction <add>, %62, %cst_28 [1] : vector<16x128xf32> to vector<16xf32>
      %64 = vector.shape_cast %63 : vector<16xf32> to vector<16x1xf32>
      %65 = math.log %64 : vector<16x1xf32>
      %66 = vector.broadcast %65 : vector<16x1xf32> to vector<16x128xf32>
      %67 = arith.subf %61, %66 : vector<16x128xf32>
      %68 = arith.subf %54, %67 : vector<16x128xf32>
      %69 = arith.mulf %57, %68 : vector<16x128xf32>
      %70 = tpu.iota {dimensions = array<i32: 0>} : vector<16x1xi32>
      %71 = vector.broadcast %3 : i32 to vector<16x1xi32>
      %72 = arith.addi %71, %70 : vector<16x1xi32>
      %73 = vector.broadcast %0 : i32 to vector<16x1xi32>
      %74 = arith.cmpi slt, %72, %73 : vector<16x1xi32>
      %cst_29 = arith.constant 0.000000e+00 : f32
      %75 = vector.shape_cast %74 : vector<16x1xi1> to vector<16x1xi1>
      %76 = vector.broadcast %75 : vector<16x1xi1> to vector<16x128xi1>
      %77 = vector.broadcast %cst_29 : f32 to vector<16x128xf32>
      %78 = arith.select %76, %69, %77 : vector<16x128xi1>, vector<16x128xf32>
      %79 = vector.extract_strided_slice %78 {offsets = [0, 0], sizes = [8, 128], strides = [1, 1]} : vector<16x128xf32> to vector<8x128xf32>
      %80 = vector.extract_strided_slice %78 {offsets = [8, 0], sizes = [8, 128], strides = [1, 1]} : vector<16x128xf32> to vector<8x128xf32>
      %81 = arith.addf %79, %80 : vector<8x128xf32>
      %c0_30 = arith.constant 0 : index
      %c0_31 = arith.constant 0 : index
      %82 = vector.load %arg10[%c0_30, %c0_31] : memref<8x128xf32, #tpu.memory_space<vmem>>, vector<8x128xf32>
      %83 = arith.addf %82, %81 : vector<8x128xf32>
      %c0_32 = arith.constant 0 : index
      %c0_33 = arith.constant 0 : index
      %84 = vector.load %arg10[%c0_32, %c0_33] : memref<8x128xf32, #tpu.memory_space<vmem>>, vector<8x128xf32>
      tpu.vector_store %arg10[%c0_32, %c0_33], %83 {strides = array<i32>} : memref<8x128xf32, #tpu.memory_space<vmem>>, vector<8x128xf32>,
    } else {
    }
    %c0_i32_16 = arith.constant 0 : i32
    %35 = arith.cmpi eq, %arg1, %c0_i32_16 : i32
    %36 = arith.extui %35 : i1 to i32
    %c0_i32_17 = arith.constant 0 : i32
    %37 = arith.cmpi ne, %36, %c0_i32_17 : i32
    scf.if %37 {
      %c0_18 = arith.constant 0 : index
      %c0_19 = arith.constant 0 : index
      %38 = vector.load %arg10[%c0_18, %c0_19] : memref<8x128xf32, #tpu.memory_space<vmem>>, vector<8x128xf32>
      %c0_20 = arith.constant 0 : index
      %c0_21 = arith.constant 0 : index
      %c0_22 = arith.constant 0 : index
      %39 = vector.load %arg6[%c0_20, %c0_21, %c0_22] : memref<1x8x128xf32, #tpu.memory_space<vmem>>, vector<1x8x128xf32>
      %40 = vector.shape_cast %39 : vector<1x8x128xf32> to vector<8x128xf32>
      %41 = vector.shape_cast %38 : vector<8x128xf32> to vector<1x8x128xf32>
      tpu.vector_store %arg6[%c0_20, %c0_21, %c0_22], %41 {strides = array<i32>} : memref<1x8x128xf32, #tpu.memory_space<vmem>>, vector<1x8x128xf32>,
    } else {
    }
    return
  }
  func.func @transform_1(%arg0: i32, %arg1: i32, %arg2: memref<16xi32, #tpu.memory_space<smem>>, %arg3: memref<16xi32, #tpu.memory_space<smem>>, %arg4: memref<1xi32, #tpu.memory_space<smem>>) -> (i32, i32, i32) {
    %c0_i32 = arith.constant 0 : i32
    %c0_i32_0 = arith.constant 0 : i32
    %c0_i32_1 = arith.constant 0 : i32
    return %arg0, %c0_i32, %c0_i32_0 : i32, i32, i32
  }
}

</mosaic_0001>

<bundles_post_ra>
// kernel: tpu_custom_call.1
= control target key start
LH: loop header
LB: loop body
LE: loop exit
PB: predicated region body
PF: predicated region fallthrough
CT: control target
= control target key end

     0   :  { %s595_s0 = inlined_call_operand.vmem [shape: s32[16], index: 0, kind: input, shape index: {}]   ;;  %s596_s2 = inlined_call_operand.<no memory space> [shape: s32[1], index: 2, kind: input, shape index: {}]   ;;  %s597_s3 = inlined_call_operand.hbm [shape: f32[16,128], index: 3, kind: input, shape index: {}]   ;;  %s598_s4 = inlined_call_operand.hbm [shape: f32[1,8,128], index: 4, kind: output, shape index: {}]   ;;  %s599_s1 = inlined_call_operand.vmem [shape: s32[16], index: 1, kind: input, shape index: {}]  }
   0x1   :  { %s9_s17 = sshll.u32 %s595_s0, 4  ;;  %s13_s20 = sshll.u32 %s599_s1, 4  ;;  %s10_s17 = int_to_ptr.vmem [resolvable:$true] %s9_s17  ;;  %s14_s20 = int_to_ptr.vmem [resolvable:$true] %s13_s20 }
   0x2   :  { %s383_s21 = scalar_lea.vmem %s10_s17, 16  ;;  %p388_p1 = scmp.lt.s32.totalorder %s10_s17, %s10_s17 }
   0x3   :  { %p384_p0 = scmp.ne.s32.totalorder %s10_s17, %s383_s21  ;;  %p389_p2 = scmp.lt.s32.totalorder %s383_s21, %s383_s21 }
   0x5   :  { %p390_p3 = por %p389_p2, %p388_p1 }
   0x7   :  { %p391_p4 = pnand %p390_p3, %p384_p0 }
   0x9   :  { %394 = shalt.err (!%p391_p4)  }
   0xa   :  { %s501_s22 = smov [#allocation7]   ;;  %s395_s23 = scalar_lea.vmem %s14_s20, 16 }
   0xb   :  { %12 = dma.vmem_to_smem %s10_s17, 16, %s501_s22, [#allocation6] }
   0xc   :  { %p396_p5 = scmp.ne.s32.totalorder %s14_s20, %s395_s23  ;;  %p400_p6 = scmp.lt.s32.totalorder %s14_s20, %s14_s20 }
   0xd   :  { %p401_p7 = scmp.lt.s32.totalorder %s395_s23, %s395_s23 }
   0xf   :  { %p402_p8 = por %p401_p7, %p400_p6 }
  0x11   :  { %p403_p9 = pnand %p402_p8, %p396_p5 }
  0x13   :  { %406 = shalt.err (!%p403_p9)  }
  0x14   :  { %s502_s0 = smov [#allocation8]  }
  0x15   :  { %16 = dma.vmem_to_smem %s14_s20, 16, %s502_s0, [#allocation6] }
  0x16   :  { %485 = dma.done.wait [#allocation6], 32 }
  0x17   :  { %486 = vsyncadd [#allocation6], 4294967264 }
  0x18   :  { %19 = sfence }
  0x19   :  { %20 = vsyncpa [#allocation11], 0  ;;  %p324_p10 = scmp.gt.s32.totalorder %s596_s2, 0  ;;  %v503_v0 = vmov 0.0  }
  0x1a   :  { %36 = vst [vmem:[#allocation5] sm:$0xff] %v503_v0  ;;  %s541_s25 = smov (%p324_p10), 0  }
  0x1b   :  { %41 = sbr.rel (!%p324_p10) target bundleno = 95 (0x5f), region = 9 }
  0x22 LB: > { %s49_s26 = sld [smem:[#allocation7 + %s495_s25]]  ;;  %s55_s28 = scalar_lea.vmem [#allocation2], %s495_s25  ;;  %s495_s25 = sphi %s541_s25, %s47_s25  }
  0x23   : > { %s548_s27 = sld [smem:[#allocation8 + %s495_s25]]  ;;  %s64_s29 = sshll.u32 %s55_s28, 4  ;;  %s65_s29 = int_to_ptr.vmem [resolvable:$true] %s64_s29 }
  0x24   : > { %s70_s30 = scalar_lea.vmem [#allocation3], %s495_s25  ;;  %s409_s14 = scalar_lea.hbm %s597_s3, 256 }
  0x25   : > { %s80_s5 = sshll.u32 %s70_s30, 4  ;;  %s552_s5 = int_to_ptr.vmem [resolvable:$true] %s80_s5 }
  0x28   : > { %s326_s6 = sshll.u32 %s49_s26, 4 }
  0x29   : > { %s52_s9 = scalar_lea.hbm %s597_s3, %s326_s6  ;;  %s327_s10 = sshll.u32 %s548_s27, 4 }
  0x2a   : > { %s407_s11 = scalar_lea.hbm %s52_s9, 16  ;;  %p410_p12 = scmp.lt.u32.totalorder %s52_s9, %s597_s3 }
  0x2b   : > { %p408_p11 = scmp.ne.s32.totalorder %s52_s9, %s407_s11  ;;  %p411_p13 = scmp.lt.u32.totalorder %s409_s14, %s407_s11 }
  0x2c   : > { %p413_p1 = scmp.lt.u32.totalorder %s407_s11, %s52_s9 }
  0x2d   : > { %p412_p0 = por %p411_p13, %p410_p12 }
  0x2f   : > { %p414_p2 = por %p413_p1, %p412_p0 }
  0x31   : > { %p415_p3 = pnand %p414_p2, %p408_p11 }
  0x33   : > { %418 = shalt.err (!%p415_p3)  }
  0x34   : > { %s419_s17 = scalar_lea.vmem %s65_s29, 16  ;;  %s504_s18 = smov [#allocation2]  }
  0x35   : > { %p420_p4 = scmp.ne.s32.totalorder %s65_s29, %s419_s17  ;;  %s421_s19 = sshll.u32 %s504_s18, 4  ;;  %s422_s19 = int_to_ptr.vmem [resolvable:$false] %s421_s19 }
  0x36   : > { %s423_s20 = scalar_lea.vmem %s422_s19, 512  ;;  %p424_p5 = scmp.lt.s32.totalorder %s65_s29, %s422_s19 }
  0x37   : > { %p425_p6 = scmp.lt.s32.totalorder %s423_s20, %s419_s17 }
  0x39   : > { %p426_p7 = por %p425_p6, %p424_p5 }
  0x3b   : > { %p427_p8 = pnand %p426_p7, %p420_p4 }
  0x3d   : > { %430 = shalt.err (!%p427_p8)  }
  0x3e   : > { %67 = dma.hbm_to_vmem [thread:$0]  %s52_s9, 16, %s65_s29, [#allocation4] }
  0x3f   : > { %s69_s23 = scalar_lea.hbm %s597_s3, %s327_s10 }
  0x40   : > { %s431_s0 = scalar_lea.hbm %s69_s23, 16  ;;  %p434_p10 = scmp.lt.u32.totalorder %s69_s23, %s597_s3 }
  0x41   : > { %p432_p9 = scmp.ne.s32.totalorder %s69_s23, %s431_s0  ;;  %p435_p11 = scmp.lt.u32.totalorder %s409_s14, %s431_s0 }
  0x42   : > { %p437_p13 = scmp.lt.u32.totalorder %s431_s0, %s69_s23 }
  0x43   : > { %p436_p12 = por %p435_p11, %p434_p10 }
  0x45   : > { %p438_p0 = por %p437_p13, %p436_p12 }
  0x47   : > { %p439_p1 = pnand %p438_p0, %p432_p9 }
  0x49   : > { %442 = shalt.err (!%p439_p1)  }
  0x4a   : > { %s443_s26 = scalar_lea.vmem %s552_s5, 16  ;;  %s505_s27 = smov [#allocation3]  }
  0x4b   : > { %p444_p2 = scmp.ne.s32.totalorder %s552_s5, %s443_s26  ;;  %s445_s28 = sshll.u32 %s505_s27, 4  ;;  %s446_s28 = int_to_ptr.vmem [resolvable:$false] %s445_s28 }
  0x4c   : > { %s447_s29 = scalar_lea.vmem %s446_s28, 512  ;;  %p448_p3 = scmp.lt.s32.totalorder %s552_s5, %s446_s28 }
  0x4d   : > { %p449_p4 = scmp.lt.s32.totalorder %s447_s29, %s443_s26 }
  0x4f   : > { %p450_p5 = por %p449_p4, %p448_p3 }
  0x51   : > { %p451_p6 = pnand %p450_p5, %p444_p2 }
  0x53   : > { %454 = shalt.err (!%p451_p6)  }
  0x54   : > { %83 = dma.hbm_to_vmem [thread:$0]  %s69_s23, 16, %s552_s5, [#allocation4 + $0x2] }
  0x55   : > { %s47_s25 = sadd.s32 1, %s495_s25  }
  0x56   : > { %p44_p7 = scmp.ge.s32.totalorder %s47_s25, 16  }
  0x58   :  { %46 = sbr.rel (!%p44_p7) target bundleno = 34 (0x22), region = 96 }
  0x5f PF:  { %p333_p8 = scmp.le.s32.totalorder %s596_s2, 0 }
  0x60   :  { %s497_s7 = smov (!%p333_p8), 0  }
  0x61   :  { %138 = sbr.rel (%p333_p8) target bundleno = 442 (0x1ba), region = 47 }
  0x68 LB: > { %487 = dma.done.wait [#allocation4], 16  ;;  %s499_s7 = sphi %s497_s7, %s144_s7  }
  0x69   : > { %488 = vsyncadd [#allocation4], 4294967280 }
  0x6a   : > { %489 = dma.done.wait [#allocation4 + $0x2], 16 }
  0x6b   : > { %490 = vsyncadd [#allocation4 + $0x2], 4294967280  ;;  %s144_s7 = sadd.s32 1, %s499_s7  }
  0x6c   : > { %p141_p9 = scmp.ge.s32.totalorder %s144_s7, 16  }
  0x6d   :  { %v158_v1 = vld [vmem:[#allocation2] sm:$0xff] (%p141_p9)  ;;  %v159_v3 = vld [vmem:[#allocation2 + $0x8] sm:$0xff] (%p141_p9)  ;;  %v211_v27 = vlaneseq (%p141_p9)  ;;  %v217_v39 = vstv (%p141_p9), %s596_s2 }
  0x6e   :  { %143 = sbr.rel (!%p141_p9) target bundleno = 104 (0x68), region = 118  ;;  %v161_v2 = vld [vmem:[#allocation3] sm:$0xff] (%p141_p9)  ;;  %163 = vmax.xlane.f32.xlu0 (%p141_p9), %v158_v1  ;;  %v162_v4 = vld [vmem:[#allocation3 + $0x8] sm:$0xff] (%p141_p9) }
  0x6f   :  { %187 = vmax.xlane.f32.xlu1 (%p141_p9), %v161_v2  ;;  %v212_v34 = vshrl.u32 (%p141_p9), %v211_v27, 7  ;;  %v227_v50 = vld [vmem:[#allocation5] sm:$0xff] (%p141_p9) }
  0x71   :  { %v213_v40 = vadd.s32 (%p141_p9), 8, %v212_v34  ;;  %vm218_vm0 = vcmp.lt.s32.totalorder (%p141_p9), %v212_v34, %v217_v39 }
  0x72   :  { %165 = vmax.xlane.f32.xlu0 (%p141_p9), %v159_v3 }
  0x73   :  { %189 = vmax.xlane.f32.xlu1 (%p141_p9), %v162_v4  ;;  %vm219_vm1 = vcmp.lt.s32.totalorder (%p141_p9), %v213_v40, %v217_v39 }
  0xfb   :  { %v164_v5 = vpop.xlane.xlu0 %163 }
  0xfc   :  { %v188_v6 = vpop.xlane.xlu1 %187  ;;  %v167_v7 = vsub.f32 %v158_v1, %v164_v5 }
  0xfd   :  { %v191_v8 = vsub.f32 %v161_v2, %v188_v6 }
  0xfe   :  { %v169_v9 = vmul.f32 1.442695, %v167_v7 }
  0xff   :  { %v193_v10 = vmul.f32 1.442695, %v191_v8  ;;  %v166_v11 = vpop.xlane.xlu0 %165 }
 0x100   :  { %v190_v12 = vpop.xlane.xlu1 %189  ;;  %363 = vpow2.f32 %v169_v9  ;;  %v168_v13 = vsub.f32 %v159_v3, %v166_v11 }
 0x101   :  { %v192_v14 = vsub.f32 %v162_v4, %v190_v12  ;;  %365 = vpow2.f32 %v193_v10 }
 0x102   :  { %v171_v15 = vmul.f32 1.442695, %v168_v13 }
 0x103   :  { %v195_v16 = vmul.f32 1.442695, %v192_v14 }
 0x104   :  { %367 = vpow2.f32 %v171_v15 }
 0x105   :  { %369 = vpow2.f32 %v195_v16 }
 0x10a   :  { %v364_v17 = vpop.eup %363 }
 0x10b   :  { %173 = vadd.xlane.f32.xlu0 %v364_v17  ;;  %v366_v18 = vpop.eup %365 }
 0x10e   :  { %v368_v19 = vpop.eup %367 }
 0x10f   :  { %197 = vadd.xlane.f32.xlu0 %v366_v18  ;;  %175 = vadd.xlane.f32.xlu1 %v368_v19  ;;  %v370_v20 = vpop.eup %369 }
 0x113   :  { %199 = vadd.xlane.f32.xlu1 %v370_v20 }
 0x198   :  { %v174_v21 = vpop.xlane.xlu0 %173 }
 0x199   :  { %371 = vlog2.f32 %v174_v21 }
 0x19c   :  { %v176_v22 = vpop.xlane.xlu1 %175  ;;  %v198_v23 = vpop.xlane.xlu0 %197 }
 0x19d   :  { %373 = vlog2.f32 %v176_v22 }
 0x19e   :  { %375 = vlog2.f32 %v198_v23 }
 0x19f   :  { %377 = vrcp.f32 %v174_v21 }
 0x1a0   :  { %v200_v24 = vpop.xlane.xlu1 %199 }
 0x1a1   :  { %379 = vlog2.f32 %v200_v24 }
 0x1a2   :  { %381 = vrcp.f32 %v176_v22 }
 0x1a3   :  { %v372_v25 = vpop.eup %371 }
 0x1a4   :  { %v178_v28 = vmul.f32 0.6931472, %v372_v25 }
 0x1a6   :  { %v181_v35 = vsub.f32 %v167_v7, %v178_v28 }
 0x1a7   :  { %v374_v26 = vpop.eup %373 }
 0x1a8   :  { %v376_v29 = vpop.eup %375  ;;  %v180_v31 = vmul.f32 0.6931472, %v374_v26 }
 0x1a9   :  { %v378_v30 = vpop.eup %377  ;;  %v202_v32 = vmul.f32 0.6931472, %v376_v29 }
 0x1aa   :  { %v182_v41 = vsub.f32 %v168_v13, %v180_v31  ;;  %v185_v42 = vmul.f32 %v378_v30, %v364_v17 }
 0x1ab   :  { %v380_v33 = vpop.eup %379  ;;  %v205_v36 = vsub.f32 %v191_v8, %v202_v32 }
 0x1ac   :  { %v204_v37 = vmul.f32 0.6931472, %v380_v33  ;;  %v382_v38 = vpop.eup %381 }
 0x1ad   :  { %v207_v43 = vsub.f32 %v181_v35, %v205_v36  ;;  %v186_v46 = vmul.f32 %v382_v38, %v368_v19 }
 0x1ae   :  { %v206_v44 = vsub.f32 %v192_v14, %v204_v37 }
 0x1af   :  { %v209_v45 = vmul.f32 %v207_v43, %v185_v42 }
 0x1b0   :  { %v208_v47 = vsub.f32 %v182_v41, %v206_v44 }
 0x1b1   :  { %v224_v49 = vsel %vm218_vm0, %v209_v45, 0.0 }
 0x1b2   :  { %v210_v48 = vmul.f32 %v208_v47, %v186_v46 }
 0x1b4   :  { %v225_v51 = vsel %vm219_vm1, %v210_v48, 0.0 }
 0x1b5   :  { %v226_v52 = vadd.f32 %v225_v51, %v224_v49 }
 0x1b7   :  { %v228_v53 = vadd.f32 %v227_v50, %v226_v52 }
 0x1b9   :  { %229 = vst [vmem:[#allocation5] sm:$0xff] %v228_v53 }
 0x1ba PF:  { %s506_s2 = smov [#allocation10]  }
 0x1bb   :  { %s241_s5 = sshll.u32 %s506_s2, 4  ;;  %s242_s5 = int_to_ptr.vmem [resolvable:$true] %s241_s5 }
 0x1bc   :  { %s455_s8 = scalar_lea.vmem %s242_s5, 128  ;;  %p460_p11 = scmp.lt.s32.totalorder %s242_s5, %s242_s5 }
 0x1bd   :  { %p456_p10 = scmp.ne.s32.totalorder %s242_s5, %s455_s8  ;;  %p461_p12 = scmp.lt.s32.totalorder %s455_s8, %s455_s8 }
 0x1bf   :  { %p462_p13 = por %p461_p12, %p460_p11 }
 0x1c0   :  { %v233_v54 = vld [vmem:[#allocation5] sm:$0xff] }
 0x1c1   :  { %234 = vst [vmem:[#allocation10] sm:$0xff] %v233_v54  ;;  %p463_p0 = pnand %p462_p13, %p456_p10 }
 0x1c3   :  { %466 = shalt.err (!%p463_p0)
}
 0x1c4   :  { %s467_s11 = scalar_lea.hbm %s598_s4, 128 }
 0x1c5   :  { %p468_p1 = scmp.ne.s32.totalorder %s598_s4, %s467_s11  ;;  %p471_p2 = scmp.lt.u32.totalorder %s467_s11, %s598_s4 }
 0x1c7   :  { %p473_p3 = pnand %p471_p2, %p468_p1 }
 0x1c9   :  { %476 = shalt.err (!%p473_p3)
}
 0x1ca   :  { %244 = dma.vmem_to_hbm [thread:$0]  %s242_s5, 128, %s598_s4, [#allocation11]  }
 0x1cb   :  { %491 = dma.done.wait [#allocation11], 128  }
 0x1cc   :  { %492 = vsyncadd [#allocation11], 4294967168 }
 0x1cd   :  { %248 = vsyncpa [#allocation11], 1 }
 0x1ce   :  { %249 = vsyncmov [#allocation4] }
 0x1d1   :  { %s250_s18 = vpop.sfrf %249 }
 0x1d2   :  { %p334_p4 = scmp.ne.s32.totalorder %s250_s18, 0 }
 0x1d4   :  { %254 = shalt.err (%p334_p4)  }
 0x1d5   :  { %256 = vsyncmov [#allocation4 + $0x1] }
 0x1d8   :  { %s257_s19 = vpop.sfrf %256 }
 0x1d9   :  { %p335_p5 = scmp.ne.s32.totalorder %s257_s19, 0 }
 0x1db   :  { %261 = shalt.err (%p335_p5)  }
 0x1dc   :  { %263 = vsyncmov [#allocation4 + $0x2] }
 0x1df   :  { %s264_s20 = vpop.sfrf %263 }
 0x1e0   :  { %p336_p6 = scmp.ne.s32.totalorder %s264_s20, 0 }
 0x1e2   :  { %268 = shalt.err (%p336_p6)  }
 0x1e3   :  { %270 = vsyncmov [#allocation4 + $0x3] }
 0x1e6   :  { %s271_s21 = vpop.sfrf %270 }
 0x1e7   :  { %p337_p7 = scmp.ne.s32.totalorder %s271_s21, 0 }
 0x1e9   :  { %275 = shalt.err (%p337_p7)  }

</bundles_post_ra>
